<compile_context>
chip_gen: v5e
topology: v5e:2x2
jax: 0.10.0
libtpu: 0.0.40
codegen_flags: <defaults>
</compile_context>

<pallas_src>
import functools

import jax
import jax.numpy as jnp
from jax.experimental import pallas as pl
from jax.experimental.pallas import tpu as pltpu


# ----------------------------------------------------------------------------- kernels
def _agg_kernel_fullk(x_ref, w_ref, b_ref, o_ref):
    # x_ref: (tm, K)  w_ref: (tn, K)  b_ref: (1, tn)  o_ref: (tm, tn)
    acc = jax.lax.dot_general(
        x_ref[...], w_ref[...],
        dimension_numbers=(((1,), (1,)), ((), ())),   # x @ w.T without an HBM transpose
        preferred_element_type=jnp.float32)
    o_ref[...] = jax.nn.sigmoid(acc + b_ref[...]).astype(o_ref.dtype)


def _agg_kernel_ktiled(x_ref, w_ref, b_ref, o_ref, acc_ref):
    # grid = (m, n, k); k is the reduction axis (marked "arbitrary", last).
    k = pl.program_id(2)

    @pl.when(k == 0)
    def _init():
        acc_ref[...] = jnp.zeros_like(acc_ref)

    acc_ref[...] += jax.lax.dot_general(
        x_ref[...], w_ref[...],
        dimension_numbers=(((1,), (1,)), ((), ())),
        preferred_element_type=jnp.float32)

    @pl.when(k == pl.num_programs(2) - 1)
    def _finalize():
        o_ref[...] = jax.nn.sigmoid(acc_ref[...] + b_ref[...]).astype(o_ref.dtype)


# ---------------------------------------------------------------------------- tiling
def _round_up(v, m):
    return ((v + m - 1) // m) * m


def _cdiv(a, b):
    return (a + b - 1) // b


_SUBLANE = {4: 8, 2: 16, 1: 32}   # sublane multiple per element width
_TILE_N_MAX = 2048                # keep output tiles lane-dense but not tile_m-starving


@functools.lru_cache(maxsize=1)
def _chip_config():
    """(vmem_limit_bytes, block_budget_bytes, n_tensorcores, k_align) for this chip."""
    cap = 64 << 20                                      # conservative default (v7x)
    try:
        cap = int(pltpu.get_tpu_info().vmem_capacity_bytes)   # 128 MiB v5e/v6e, 64 MiB v7x
    except Exception:
        pass
    kind = ""
    try:
        kind = jax.devices()[0].device_kind.lower()
    except Exception:
        pass
    # Multi-TensorCore chips (megacore sharding of "parallel" grid axes).
    n_tc = 2 if any(t in kind for t in ("v7", "v4", "v5p")) else 1
    # MXU depth alignment for K tiles: 128 on v5e (4x128 MXU), 256 on v6e/v7x (2x256).
    k_align = 128 if any(t in kind for t in ("v5 lite", "v5lite", "v5e")) else 256
    # Single derate: leave ~8 MiB for Mosaic internal scratch, ~6 MiB slack for
    # pipeline bookkeeping; our block accounting already includes double buffers.
    vmem_limit = max(cap - (8 << 20), (cap * 3) // 4)
    budget = max(vmem_limit - (6 << 20), (vmem_limit * 3) // 4)
    return vmem_limit, budget, n_tc, k_align


def _select_tiles(M, K, N, x_bytes, w_bytes, o_bytes, budget, n_cores, k_align):
    m_align = _SUBLANE.get(x_bytes, 8)
    M_r = _round_up(M, m_align)
    N_pad = _round_up(N, 128)
    K128 = _round_up(K, 128)

    w_half = budget // 2                          # share reserved for the weight (+bias)

    # ---- N tiling: prefer full N; shrink in 128-lane steps if the full-K weight block
    #      (double-buffer accounted) would not fit in its budget share.
    tile_n = min(N_pad, _TILE_N_MAX)
    if 2 * tile_n * K128 * w_bytes > w_half:
        tile_n = ((w_half // (2 * K128 * w_bytes)) // 128) * 128
        tile_n = max(128, min(tile_n, N_pad))
    n_n = _cdiv(N_pad // 128, tile_n // 128)
    tile_n = 128 * _cdiv(N_pad // 128, n_n)       # near-divisor of N_pad: minimal padding
    N_out = tile_n * n_n

    # ---- K tiling: full-K (weight block resident, no accumulator) if it fits,
    #      otherwise stream K in k_align-deep slabs that near-divide round_up(K, 128).
    if 2 * tile_n * K128 * w_bytes <= w_half:
        tile_k, n_k, K_pad = K, 1, K
    else:
        tk_max = max(k_align, ((w_half // (2 * tile_n * w_bytes)) // k_align) * k_align)
        n_k = _cdiv(K128, tk_max)
        tile_k = k_align * _cdiv(_cdiv(K128, n_k), k_align)
        n_k = _cdiv(K128, tile_k)
        K_pad = tile_k * n_k

    # ---- M tiling: fill the remaining budget (lane-padded sizes, 2 buffers each).
    k_lay = _round_up(tile_k, 128)
    fixed = 2 * tile_n * k_lay * w_bytes + 2 * 8 * tile_n * 4        # weight + bias bufs
    per_row = 2 * k_lay * x_bytes + 2 * tile_n * o_bytes             # x + out bufs
    if n_k > 1:
        per_row += tile_n * 4                                        # f32 accumulator
    tile_m = ((budget - fixed) // max(per_row, 1)) // m_align * m_align
    if n_k == 1:
        tile_m = min(tile_m, 1024)    # weight-resident path: diminishing returns past ~1K
    # Multi-TC chips only: ensure >=2 parallel steps so both TensorCores get work.
    if n_cores >= 2 and n_n == 1 and M_r >= 2 * m_align:
        tile_m = min(tile_m, _round_up(_cdiv(M_r, 2), m_align))
    tile_m = max(m_align, min(tile_m, M_r))
    return tile_m, tile_n, tile_k, N_out, K_pad, n_n, n_k


# --------------------------------------------------------------------------- wrapper
def _pallas_forward(x2, weight, bias, *, budget, vmem_limit, n_cores, k_align):
    M, K = x2.shape
    N = weight.shape[0]
    x_bytes = x2.dtype.itemsize
    w_bytes = weight.dtype.itemsize
    o_bytes = x2.dtype.itemsize

    tile_m, tile_n, tile_k, N_out, K_pad, n_n, n_k = _select_tiles(
        M, K, N, x_bytes, w_bytes, o_bytes, budget, n_cores, k_align)
    n_m = _cdiv(M, tile_m)

    # One-time pad of the (small) weight/bias to lane-dense shapes. x is NOT padded
    # along M (ragged last M block is handled by Pallas boundary-block masking); it is
    # only padded along K in the rare streamed-K path.
    wp = weight
    if N_out != N or K_pad != K:
        wp = jnp.pad(weight, ((0, N_out - N), (0, K_pad - K)))
    bp = bias.reshape(1, N)
    if N_out != N:
        bp = jnp.pad(bp, ((0, 0), (0, N_out - N)))
    xp = x2
    if K_pad != K:
        # TODO(synk): mask the K tail in-kernel (or allow_input_fusion) to avoid this copy.
        xp = jnp.pad(x2, ((0, 0), (0, K_pad - K)))

    if n_k == 1:
        grid = (n_m, n_n)
        in_specs = [
            pl.BlockSpec((tile_m, K_pad), lambda i, j: (i, 0)),      # x rows tile
            pl.BlockSpec((tile_n, K_pad), lambda i, j: (j, 0)),      # full-K weight slab
            pl.BlockSpec((1, tile_n), lambda i, j: (0, j)),          # bias
        ]
        out_specs = pl.BlockSpec((tile_m, tile_n), lambda i, j: (i, j))
        scratch = []
        kernel = _agg_kernel_fullk
        dims = ("parallel", "parallel")
    else:
        grid = (n_m, n_n, n_k)
        in_specs = [
            pl.BlockSpec((tile_m, tile_k), lambda i, j, k: (i, k)),
            pl.BlockSpec((tile_n, tile_k), lambda i, j, k: (j, k)),
            pl.BlockSpec((1, tile_n), lambda i, j, k: (0, j)),
        ]
        out_specs = pl.BlockSpec((tile_m, tile_n), lambda i, j, k: (i, j))
        scratch = [pltpu.VMEM((tile_m, tile_n), jnp.float32)]
        kernel = _agg_kernel_ktiled
        dims = ("parallel", "parallel", "arbitrary")

    out = pl.pallas_call(
        kernel,
        out_shape=jax.ShapeDtypeStruct((M, N_out), x2.dtype),
        grid_spec=pltpu.PrefetchScalarGridSpec(
            num_scalar_prefetch=0,
            grid=grid,
            in_specs=in_specs,
            out_specs=out_specs,
            scratch_shapes=scratch),
        compiler_params=pltpu.CompilerParams(
            dimension_semantics=dims,
            vmem_limit_bytes=int(vmem_limit)),
    )(xp, wp, bp)

    return out if N_out == N else out[:, :N]


def aggregation_forward(x, weight, bias):
    """y = sigmoid(x @ weight.T + bias).

    x:      (..., input_dim)
    weight: (out_dim, input_dim)   (PyTorch nn.Linear layout, NOT pre-transposed)
    bias:   (out_dim,)
    """
    K = weight.shape[1]
    N = weight.shape[0]
    lead = x.shape[:-1]
    x2 = x.reshape(-1, K)

    vmem_limit, budget, n_cores, k_align = _chip_config()
    out = _pallas_forward(x2, weight, bias, budget=budget, vmem_limit=vmem_limit,
                          n_cores=n_cores, k_align=k_align)
    return out.reshape(*lead, N)


# ------------------------------------------------------------------------------ demo
if __name__ == "__main__":
    # NOTE: at these toy sizes a standalone pallas_call is pure launch/step overhead;
    # in a real model this op should be fused or batched. Kept standalone here only to
    # exercise the kernel paths (3-D input, ragged M boundary block, N padding).
    key = jax.random.PRNGKey(0)
    k1, k2, k3, k4, k5, k6 = jax.random.split(key, 6)

    # Case 1: module-consistent small shapes (batch=2, seq=4, input_dim=32, out_dim=32).
    input_dim, out_dim = 32, 32
    bound = 1.0 / (input_dim ** 0.5)
    weight = jax.random.uniform(k1, (out_dim, input_dim), jnp.float32, -bound, bound)
    bias = jax.random.uniform(k2, (out_dim,), jnp.float32, -bound, bound)
    x = jax.random.normal(k3, (2, 4, input_dim), jnp.float32)

    y = jax.block_until_ready(aggregation_forward(x, weight, bias))
    y_ref = jax.nn.sigmoid(x @ weight.T + bias)
    assert y.shape == (2, 4, out_dim)
    assert jnp.allclose(y, y_ref, atol=2e-5, rtol=2e-5)

    # Case 2: ragged / unaligned shapes (exercises the boundary M block — no x padding —
    # plus weight/bias N padding and the output N slice).
    M2, K2, N2 = 300, 200, 96
    bound2 = 1.0 / (K2 ** 0.5)
    w2 = jax.random.uniform(k4, (N2, K2), jnp.float32, -bound2, bound2)
    b2 = jax.random.uniform(k5, (N2,), jnp.float32, -bound2, bound2)
    x2 = jax.random.normal(k6, (M2, K2), jnp.float32)

    y2 = jax.block_until_ready(aggregation_forward(x2, w2, b2))
    y2_ref = jax.nn.sigmoid(x2 @ w2.T + b2)
    assert y2.shape == (M2, N2)
    assert jnp.allclose(y2, y2_ref, atol=2e-5, rtol=2e-5)

    print("KERNEL_OK")
</pallas_src>

<mosaic_0001>
module attributes {stable_mosaic.version = 11 : i64} {
  func.func @_agg_kernel_fullk(%arg0: i32, %arg1: i32, %arg2: memref<8x32xf32, #tpu.memory_space<vmem>>, %arg3: memref<128x32xf32, #tpu.memory_space<vmem>>, %arg4: memref<1x128xf32, #tpu.memory_space<vmem>>, %arg5: memref<8x128xf32, #tpu.memory_space<vmem>>) attributes {dimension_semantics = [#tpu.dimension_semantics<parallel>, #tpu.dimension_semantics<parallel>], iteration_bounds = array<i64: 1, 1>, scalar_prefetch = 0 : i64, scratch_operands = 0 : i64, tpu.core_type = #tpu.core_type<tc>, window_params = [{transform_indices = @transform_0, window_bounds = array<i64: 8, 32>}, {transform_indices = @transform_1, window_bounds = array<i64: 128, 32>}, {transform_indices = @transform_2, window_bounds = array<i64: 1, 128>}, {transform_indices = @transform_3, window_bounds = array<i64: 8, 128>}]} {
    %c0 = arith.constant 0 : index
    %c0_0 = arith.constant 0 : index
    %0 = vector.load %arg2[%c0, %c0_0] : memref<8x32xf32, #tpu.memory_space<vmem>>, vector<8x32xf32>
    %c0_1 = arith.constant 0 : index
    %c0_2 = arith.constant 0 : index
    %1 = vector.load %arg3[%c0_1, %c0_2] : memref<128x32xf32, #tpu.memory_space<vmem>>, vector<128x32xf32>
    %cst = arith.constant dense<0.000000e+00> : vector<8x128xf32>
    %2 = tpu.matmul %0, %1, %cst {dimension_numbers = #tpu.dot_dimension_numbers<[1], [1], [0], [0], [0, 0, 1, 0], [], []>} : vector<8x32xf32>, vector<128x32xf32>, vector<8x128xf32> -> vector<8x128xf32>
    %c0_3 = arith.constant 0 : index
    %c0_4 = arith.constant 0 : index
    %3 = vector.load %arg4[%c0_3, %c0_4] : memref<1x128xf32, #tpu.memory_space<vmem>>, vector<1x128xf32>
    %4 = vector.broadcast %3 : vector<1x128xf32> to vector<8x128xf32>
    %5 = arith.addf %2, %4 : vector<8x128xf32>
    %6 = arith.negf %5 : vector<8x128xf32>
    %7 = math.exp %6 : vector<8x128xf32>
    %cst_5 = arith.constant 1.000000e+00 : f32
    %8 = vector.broadcast %cst_5 : f32 to vector<8x128xf32>
    %9 = arith.addf %8, %7 : vector<8x128xf32>
    %10 = arith.divf %8, %9 : vector<8x128xf32>
    %c0_6 = arith.constant 0 : index
    %c0_7 = arith.constant 0 : index
    %11 = vector.load %arg5[%c0_6, %c0_7] : memref<8x128xf32, #tpu.memory_space<vmem>>, vector<8x128xf32>
    tpu.vector_store %arg5[%c0_6, %c0_7], %10 {strides = array<i32>} : memref<8x128xf32, #tpu.memory_space<vmem>>, vector<8x128xf32>,
    return
  }
  func.func @transform_0(%arg0: i32, %arg1: i32) -> (i32, i32) {
    %c0_i32 = arith.constant 0 : i32
    %c0_i32_0 = arith.constant 0 : i32
    return %arg0, %c0_i32 : i32, i32
  }
  func.func @transform_1(%arg0: i32, %arg1: i32) -> (i32, i32) {
    %c0_i32 = arith.constant 0 : i32
    %c0_i32_0 = arith.constant 0 : i32
    return %arg1, %c0_i32 : i32, i32
  }
  func.func @transform_2(%arg0: i32, %arg1: i32) -> (i32, i32) {
    %c0_i32 = arith.constant 0 : i32
    %c0_i32_0 = arith.constant 0 : i32
    return %c0_i32, %arg1 : i32, i32
  }
  func.func @transform_3(%arg0: i32, %arg1: i32) -> (i32, i32) {
    %c0_i32 = arith.constant 0 : i32
    return %arg0, %arg1 : i32, i32
  }
}

</mosaic_0001>

<bundles_post_ra>
// kernel: tpu_custom_call.1
= control target key start
LH: loop header
LB: loop body
LE: loop exit
PB: predicated region body
PF: predicated region fallthrough
CT: control target
= control target key end

     0   :  { %vm36_vm0 = vcmask 261120   ;;  %s289_s0 = inlined_call_operand.vmem [shape: f32[8,32], index: 0, kind: input, shape index: {}]   ;;  %s290_s1 = inlined_call_operand.vmem [shape: f32[128,32], index: 1, kind: input, shape index: {}]   ;;  %s291_s2 = inlined_call_operand.vmem [shape: f32[1,128], index: 2, kind: input, shape index: {}]   ;;  %s292_s3 = inlined_call_operand.hbm [shape: f32[8,128], index: 3, kind: output, shape index: {}]  }
   0x1   :  { %v31_v0 = vld [vmem:[%s290_s1 + $0x78] sm:$0xff]  ;;  %v30_v1 = vld [vmem:[%s290_s1 + $0x70] sm:$0xff] }
   0x2   :  { %144 = vmatpush.xpose.msk.msra.mxu0 %vm36_vm0, %v31_v0 }
   0x3   :  { %8 = vsyncpa [#allocation3], 0  ;;  %v29_v2 = vld [vmem:[%s290_s1 + $0x68] sm:$0xff]  ;;  %v28_v3 = vld [vmem:[%s290_s1 + $0x60] sm:$0xff] }
   0x4   :  { %v27_v4 = vld [vmem:[%s290_s1 + $0x58] sm:$0xff]  ;;  %v26_v5 = vld [vmem:[%s290_s1 + $0x50] sm:$0xff]  ;;  %v25_v6 = vld [vmem:[%s290_s1 + $0x48] sm:$0xff] }
   0x5   :  { %v24_v7 = vld [vmem:[%s290_s1 + $0x40] sm:$0xff]  ;;  %v23_v8 = vld [vmem:[%s290_s1 + $0x38] sm:$0xff]  ;;  %v22_v9 = vld [vmem:[%s290_s1 + $0x30] sm:$0xff] }
   0x6   :  { %145 = vmatpush.xpose.msk.msra.mxu0 %vm36_vm0, %v30_v1  ;;  %v21_v10 = vld [vmem:[%s290_s1 + $0x28] sm:$0xff]  ;;  %v20_v11 = vld [vmem:[%s290_s1 + $0x20] sm:$0xff]  ;;  %v19_v12 = vld [vmem:[%s290_s1 + $0x18] sm:$0xff] }
   0x7   :  { %v18_v13 = vld [vmem:[%s290_s1 + $0x10] sm:$0xff]  ;;  %v17_v14 = vld [vmem:[%s290_s1 + $0x8] sm:$0xff]  ;;  %v16_v15 = vld [vmem:[%s290_s1] sm:$0xff] }
   0x8   :  { %v15_v16 = vld [vmem:[%s289_s0] sm:$0xff]  ;;  %s194_s0 = smov [#allocation2]  }
   0x9   :  { %v163_v17 = vld [vmem:[%s291_s2] ss:$0 sm:$0xff]  ;;  %s133_s1 = sshll.u32 %s194_s0, 4  ;;  %s135_s2 = sshll.u32 %s292_s3, 4  ;;  %s134_s1 = int_to_ptr.vmem [resolvable:$true] %s133_s1  ;;  %s136_s2 = int_to_ptr.hbm [resolvable:$true] %s135_s2 }
   0xa   :  { %146 = vmatpush.xpose.msk.msra.mxu0 %vm36_vm0, %v29_v2 }
   0xe   :  { %147 = vmatpush.xpose.msk.msra.mxu0 %vm36_vm0, %v28_v3 }
  0x12   :  { %148 = vmatpush.xpose.msk.msra.mxu0 %vm36_vm0, %v27_v4 }
  0x16   :  { %149 = vmatpush.xpose.msk.msra.mxu0 %vm36_vm0, %v26_v5 }
  0x1a   :  { %150 = vmatpush.xpose.msk.msra.mxu0 %vm36_vm0, %v25_v6 }
  0x1e   :  { %151 = vmatpush.xpose.msk.msra.mxu0 %vm36_vm0, %v24_v7 }
  0x22   :  { %152 = vmatpush.xpose.msk.msra.mxu0 %vm36_vm0, %v23_v8 }
  0x26   :  { %153 = vmatpush.xpose.msk.msra.mxu0 %vm36_vm0, %v22_v9 }
  0x2a   :  { %154 = vmatpush.xpose.msk.msra.mxu0 %vm36_vm0, %v21_v10 }
  0x2e   :  { %155 = vmatpush.xpose.msk.msra.mxu0 %vm36_vm0, %v20_v11 }
  0x32   :  { %156 = vmatpush.xpose.msk.msra.mxu0 %vm36_vm0, %v19_v12 }
  0x36   :  { %157 = vmatpush.xpose.msk.msra.mxu0 %vm36_vm0, %v18_v13 }
  0x3a   :  { %158 = vmatpush.xpose.msk.msra.mxu0 %vm36_vm0, %v17_v14 }
  0x3e   :  { %159 = vmatpush.xpose.msk.msra.mxu0 %vm36_vm0, %v16_v15 }
  0x41   :  { %160 = vmatmul.msk.f32.vlgmr.msra.gmra.mxu0 %vm36_vm0, %v15_v16 }
  0xbe   :  { %v105_v18 = vpop.f32.mrf.mxu0 }
  0xbf   :  { %v106_v19 = vadd.f32 %v163_v17, %v105_v18 }
  0xc1   :  { %v161_v20 = vmul.f32 -1.442695, %v106_v19 }
  0xc3   :  { %164 = vpow2.f32 %v161_v20 }
  0xc9   :  { %v165_v21 = vpop.eup %164 }
  0xca   :  { %v111_v22 = vadd.f32 1.0, %v165_v21 }
  0xcc   :  { %166 = vrcp.f32 %v111_v22  ;;  %v123_v26 = vand.u32 2147483648, %v111_v22  ;;  %v121_v28 = vand.u32 2147483647, %v111_v22  ;;  %vm117_vm2 = vweird.f32 %v111_v22 }
  0xce   :  { %v124_v30 = vor.u32 1.1754944e-38, %v123_v26  ;;  %vm122_vm4 = vcmp.eq.f32.partialorder %v121_v28, 8.507059e+37 }
  0xd2   :  { %v167_v23 = vpop.eup %166 }
  0xd3   :  { %v113_v24 = vmul.f32 %v167_v23, %v111_v22  ;;  %vm118_vm1 = vweird.f32 %v167_v23 }
  0xd4   :  { %vm119_vm3 = vmor %vm117_vm2, %vm118_vm1 }
  0xd5   :  { %v114_v25 = vsub.f32 1.0, %v113_v24 }
  0xd7   :  { %v115_v27 = vmul.f32 %v167_v23, %v114_v25 }
  0xd9   :  { %v116_v29 = vadd.f32 %v167_v23, %v115_v27 }
  0xdb   :  { %v120_v31 = vsel %vm119_vm3, %v167_v23, %v116_v29 }
  0xdc   :  { %v125_v32 = vsel %vm122_vm4, %v124_v30, %v120_v31 }
  0xdd   :  { %127 = vst [vmem:[#allocation2] sm:$0xff] %v125_v32 }
  0xde   :  { %138 = dma.vmem_to_hbm [thread:$0]  %s134_s1, 128, %s136_s2, [#allocation3]  }
  0xdf   :  { %192 = dma.done.wait [#allocation3], 128  }
  0xe0   :  { %193 = vsyncadd [#allocation3], 4294967168 }
  0xe1   :  { %143 = vsyncpa [#allocation3], 1 }

</bundles_post_ra>
